<compile_context>
chip_gen: v6e
topology: v6e:2x2x1
jax: 0.10.0
libtpu: 0.0.40
codegen_flags: <defaults>
</compile_context>

<pallas_src>
import functools

import jax
import jax.numpy as jnp
from jax.experimental import pallas as pl
from jax.experimental.pallas import tpu as pltpu


def _round_up(v: int, m: int) -> int:
    return (v + m - 1) // m * m


# ----------------------------------------------------------------------------
# Kernels
# ----------------------------------------------------------------------------
def _ffn_kernel_full(x_ref, w1_ref, b1_ref, w2_ref, b2_ref, o_ref,
                     *, compute_dtype):
    """Whole d_ff resident: single pass per row tile, no accumulator scratch."""
    x = x_ref[...].astype(compute_dtype)                      # cast on VPU
    h = jnp.dot(x, w1_ref[...], preferred_element_type=jnp.float32)
    h = h + b1_ref[...]
    h = h * jax.nn.sigmoid(h)                                  # SiLU in f32
    y = jnp.dot(h.astype(compute_dtype), w2_ref[...],
                preferred_element_type=jnp.float32)
    o_ref[...] = (y + b2_ref[...]).astype(o_ref.dtype)


def _ffn_kernel_chunked(x_ref, w1_ref, b1_ref, w2_ref, b2_ref, o_ref, acc_ref,
                        *, compute_dtype):
    """d_ff split into chunks (inner grid axis k); accumulate GEMM2 in f32."""
    k = pl.program_id(1)

    x = x_ref[...].astype(compute_dtype)
    h = jnp.dot(x, w1_ref[...], preferred_element_type=jnp.float32)
    h = h + b1_ref[...]
    h = h * jax.nn.sigmoid(h)
    contrib = jnp.dot(h.astype(compute_dtype), w2_ref[...],
                      preferred_element_type=jnp.float32)

    @pl.when(k == 0)
    def _first():
        acc_ref[...] = contrib

    @pl.when(k != 0)
    def _accum():
        acc_ref[...] += contrib

    @pl.when(k == pl.num_programs(1) - 1)
    def _store():
        o_ref[...] = (acc_ref[...] + b2_ref[...]).astype(o_ref.dtype)


# ----------------------------------------------------------------------------
# Parameter prep (hoisted, once per model)
# ----------------------------------------------------------------------------
def prepare_ffn_params(w1, b1, w2, b2, compute_dtype=jnp.bfloat16):
    """w1: (d_ff, d_model), w2: (d_model, d_ff) -- PyTorch nn.Linear (out, in)."""
    w1_t = jnp.asarray(w1).T.astype(compute_dtype)           # (d_model, d_ff)
    w2_t = jnp.asarray(w2).T.astype(compute_dtype)           # (d_ff, d_model)
    b1_2d = jnp.asarray(b1).reshape(1, -1).astype(jnp.float32)
    b2_2d = jnp.asarray(b2).reshape(1, -1).astype(jnp.float32)
    return w1_t, b1_2d, w2_t, b2_2d


# ----------------------------------------------------------------------------
# Tile selection / VMEM budgeting
# ----------------------------------------------------------------------------
def _vmem_budget_bytes() -> int:
    cap = None
    try:
        cap = getattr(pltpu.get_tpu_info(), "vmem_capacity_bytes", None)
    except Exception:
        cap = None
    if not cap:
        cap = 64 * 1024 * 1024          # conservative default (v7x per-core)
    # ~80% of physical VMEM: ~52 MB on v7x, ~102 MB on v5e/v6e.
    return int(cap * 0.8)


def _footprint_bytes(tm, tff, d_model, x_bytes, c_bytes, o_bytes, chunked):
    fp = 2 * tm * d_model * x_bytes                 # x tile (double-buffered)
    fp += 2 * tm * d_model * o_bytes                # output tile
    fp += 2 * d_model * tff * c_bytes               # w1 block
    fp += 2 * tff * d_model * c_bytes               # w2 block
    fp += 2 * 8 * tff * 4 + 2 * 8 * d_model * 4     # biases (sublane-padded)
    fp += tm * tff * (4 + c_bytes)                  # f32 h + compute-dtype copy
    if chunked:
        fp += tm * d_model * 4                      # f32 accumulator scratch
    return fp


def _select_tiles(M, d_model, d_ff, x_bytes, c_bytes, o_bytes, tm_max, budget):
    t = min(_round_up(tm_max, 16), _round_up(M, 16))
    tm_candidates = []
    while t >= 16:
        if t not in tm_candidates:
            tm_candidates.append(t)
        t = _round_up(t // 2, 16) if t > 16 else 0

    # Pass 1: whole d_ff resident (weights DMA'd once, no accumulator).
    for tm in tm_candidates:
        if _footprint_bytes(tm, d_ff, d_model, x_bytes, c_bytes, o_bytes,
                            chunked=False) <= budget:
            return tm, d_ff

    # Pass 2: chunk d_ff; chunks must divide d_ff and be multiples of 128.
    ff_candidates = sorted((c for c in range(128, d_ff, 128) if d_ff % c == 0),
                           reverse=True)
    for tm in tm_candidates:                    # biggest tm first (weight reuse)
        for tff in ff_candidates:
            if _footprint_bytes(tm, tff, d_model, x_bytes, c_bytes, o_bytes,
                                chunked=True) <= budget:
                return tm, tff

    # Last resort: smallest row tile, whole d_ff (let Mosaic manage VMEM).
    return tm_candidates[-1], d_ff


# ----------------------------------------------------------------------------
# Forward wrapper
# ----------------------------------------------------------------------------
def conformer_feed_forward(x, w1_t, b1_2d, w2_t, b2_2d, *, tm_max=512):
    """x: (B, T, d_model); params from prepare_ffn_params."""
    B, T, d_model = x.shape
    d_ff = w1_t.shape[1]
    compute_dtype = w1_t.dtype
    out_dtype = x.dtype

    M = B * T
    x_bytes = jnp.dtype(x.dtype).itemsize
    c_bytes = jnp.dtype(compute_dtype).itemsize
    o_bytes = jnp.dtype(out_dtype).itemsize

    budget = _vmem_budget_bytes()
    tm, tff = _select_tiles(M, d_model, d_ff, x_bytes, c_bytes, o_bytes,
                            tm_max, budget)
    M_pad = _round_up(M, tm)
    n_row = M_pad // tm
    n_ff = d_ff // tff
    chunked = n_ff > 1

    # x stays in its native dtype (cast happens inside the kernel); only pad
    # rows so M_pad is a multiple of tm. Padded rows are sliced off at the end.
    x2d = x.reshape(M, d_model)
    if M_pad != M:
        x2d = jnp.pad(x2d, ((0, M_pad - M), (0, 0)))

    footprint = _footprint_bytes(tm, tff, d_model, x_bytes, c_bytes, o_bytes,
                                 chunked)
    vmem_limit = int(min(budget, max(footprint + (4 << 20), 32 << 20)))

    weight_bytes = 2 * d_model * d_ff * c_bytes
    if chunked and n_row > 1:
        weight_bytes *= n_row                   # weights re-streamed per row tile
    cost = pl.CostEstimate(
        flops=4 * M_pad * d_model * d_ff,                   # 2 GEMMs
        transcendentals=M_pad * d_ff,                       # sigmoid
        bytes_accessed=(M_pad * d_model * (x_bytes + o_bytes)
                        + weight_bytes + (d_ff + d_model) * 4),
    )

    if not chunked:
        grid = (n_row,)
        in_specs = [
            pl.BlockSpec((tm, d_model), lambda i: (i, 0)),
            pl.BlockSpec((d_model, d_ff), lambda i: (0, 0)),
            pl.BlockSpec((1, d_ff), lambda i: (0, 0)),
            pl.BlockSpec((d_ff, d_model), lambda i: (0, 0)),
            pl.BlockSpec((1, d_model), lambda i: (0, 0)),
        ]
        out_specs = pl.BlockSpec((tm, d_model), lambda i: (i, 0))
        scratch_shapes = []
        kernel = functools.partial(_ffn_kernel_full, compute_dtype=compute_dtype)
        dim_sem = ("parallel",)
    else:
        grid = (n_row, n_ff)
        in_specs = [
            pl.BlockSpec((tm, d_model), lambda i, k: (i, 0)),
            pl.BlockSpec((d_model, tff), lambda i, k: (0, k)),
            pl.BlockSpec((1, tff), lambda i, k: (0, k)),
            pl.BlockSpec((tff, d_model), lambda i, k: (k, 0)),
            pl.BlockSpec((1, d_model), lambda i, k: (0, 0)),
        ]
        out_specs = pl.BlockSpec((tm, d_model), lambda i, k: (i, 0))
        scratch_shapes = [pltpu.VMEM((tm, d_model), jnp.float32)]
        kernel = functools.partial(_ffn_kernel_chunked,
                                   compute_dtype=compute_dtype)
        dim_sem = ("parallel", "arbitrary")

    out = pl.pallas_call(
        kernel,
        out_shape=jax.ShapeDtypeStruct((M_pad, d_model), out_dtype),
        grid_spec=pltpu.PrefetchScalarGridSpec(
            num_scalar_prefetch=0,
            grid=grid,
            in_specs=in_specs,
            out_specs=out_specs,
            scratch_shapes=scratch_shapes,
        ),
        compiler_params=pltpu.CompilerParams(
            dimension_semantics=dim_sem,
            vmem_limit_bytes=vmem_limit,
        ),
        cost_estimate=cost,
    )(x2d, w1_t, b1_2d, w2_t, b2_2d)

    if M_pad != M:
        out = out[:M]
    return out.reshape(B, T, d_model)


# ----------------------------------------------------------------------------
# Self-test
# ----------------------------------------------------------------------------
if __name__ == "__main__":
    B, T, d_model, d_ff = 2, 8, 32, 64

    key = jax.random.PRNGKey(0)
    k_x, k_w1, k_b1, k_w2, k_b2 = jax.random.split(key, 5)

    # PyTorch nn.Linear layout: (out_features, in_features).
    x = jax.random.normal(k_x, (B, T, d_model), dtype=jnp.float32)
    w1 = jax.random.normal(k_w1, (d_ff, d_model), dtype=jnp.float32) / d_model ** 0.5
    b1 = jax.random.normal(k_b1, (d_ff,), dtype=jnp.float32) * 0.01
    w2 = jax.random.normal(k_w2, (d_model, d_ff), dtype=jnp.float32) / d_ff ** 0.5
    b2 = jax.random.normal(k_b2, (d_model,), dtype=jnp.float32) * 0.01

    compute_dtype = jnp.bfloat16
    params = prepare_ffn_params(w1, b1, w2, b2, compute_dtype)

    fwd = jax.jit(functools.partial(conformer_feed_forward, tm_max=512))
    y = jax.block_until_ready(fwd(x, *params))
    assert y.shape == (B, T, d_model)

    # Reference 1: same bf16-operand / f32-accumulate math as the kernel.
    def ref_matched(x, w1_t, b1_2d, w2_t, b2_2d):
        h = jnp.dot(x.reshape(-1, d_model).astype(compute_dtype), w1_t,
                    preferred_element_type=jnp.float32) + b1_2d
        h = h * jax.nn.sigmoid(h)
        y = jnp.dot(h.astype(compute_dtype), w2_t,
                    preferred_element_type=jnp.float32) + b2_2d
        return y.reshape(B, T, d_model).astype(x.dtype)

    # Reference 2: full-f32 PyTorch semantics (loose tol covers bf16 rounding).
    def ref_f32(x, w1, b1, w2, b2):
        h = jnp.einsum("btd,fd->btf", x, w1) + b1
        h = h * jax.nn.sigmoid(h)
        return jnp.einsum("btf,df->btd", h, w2) + b2

    y_matched = ref_matched(x, *params)
    y_full = ref_f32(x, w1, b1, w2, b2)
    assert jnp.allclose(y, y_matched, atol=5e-3, rtol=5e-3), \
        "mismatch vs bf16-matched reference"
    assert jnp.allclose(y, y_full, atol=5e-2, rtol=5e-2), \
        "mismatch vs f32 reference"

    print("KERNEL_OK")
</pallas_src>

<mosaic_0001>
module attributes {stable_mosaic.version = 11 : i64} {
  func.func @_ffn_kernel_full(%arg0: i32, %arg1: memref<16x32xf32, #tpu.memory_space<vmem>>, %arg2: memref<32x64xbf16, #tpu.memory_space<vmem>>, %arg3: memref<1x64xf32, #tpu.memory_space<vmem>>, %arg4: memref<64x32xbf16, #tpu.memory_space<vmem>>, %arg5: memref<1x32xf32, #tpu.memory_space<vmem>>, %arg6: memref<16x32xf32, #tpu.memory_space<vmem>>) attributes {dimension_semantics = [#tpu.dimension_semantics<parallel>], iteration_bounds = array<i64: 1>, scalar_prefetch = 0 : i64, scratch_operands = 0 : i64, tpu.core_type = #tpu.core_type<tc>, window_params = [{transform_indices = @transform_0, window_bounds = array<i64: 16, 32>}, {pipeline_mode = #tpu.pipeline_mode<synchronous>, transform_indices = @transform_1, window_bounds = array<i64: 32, 64>}, {pipeline_mode = #tpu.pipeline_mode<synchronous>, transform_indices = @transform_2, window_bounds = array<i64: 1, 64>}, {pipeline_mode = #tpu.pipeline_mode<synchronous>, transform_indices = @transform_3, window_bounds = array<i64: 64, 32>}, {pipeline_mode = #tpu.pipeline_mode<synchronous>, transform_indices = @transform_4, window_bounds = array<i64: 1, 32>}, {transform_indices = @transform_5, window_bounds = array<i64: 16, 32>}]} {
    %c0 = arith.constant 0 : index
    %c0_0 = arith.constant 0 : index
    %0 = vector.load %arg1[%c0, %c0_0] : memref<16x32xf32, #tpu.memory_space<vmem>>, vector<16x32xf32>
    %1 = arith.truncf %0 : vector<16x32xf32> to vector<16x32xbf16>
    %c0_1 = arith.constant 0 : index
    %c0_2 = arith.constant 0 : index
    %2 = vector.load %arg2[%c0_1, %c0_2] : memref<32x64xbf16, #tpu.memory_space<vmem>>, vector<32x64xbf16>
    %cst = arith.constant dense<0.000000e+00> : vector<16x64xf32>
    %3 = tpu.matmul %1, %2, %cst {dimension_numbers = #tpu.dot_dimension_numbers<[1], [0], [0], [1], [0, 0, 1, 1], [], []>} : vector<16x32xbf16>, vector<32x64xbf16>, vector<16x64xf32> -> vector<16x64xf32>
    %c0_3 = arith.constant 0 : index
    %c0_4 = arith.constant 0 : index
    %4 = vector.load %arg3[%c0_3, %c0_4] : memref<1x64xf32, #tpu.memory_space<vmem>>, vector<1x64xf32>
    %5 = vector.broadcast %4 : vector<1x64xf32> to vector<16x64xf32>
    %6 = arith.addf %3, %5 : vector<16x64xf32>
    %7 = arith.negf %6 : vector<16x64xf32>
    %8 = math.exp %7 : vector<16x64xf32>
    %cst_5 = arith.constant 1.000000e+00 : f32
    %9 = vector.broadcast %cst_5 : f32 to vector<16x64xf32>
    %10 = arith.addf %9, %8 : vector<16x64xf32>
    %11 = arith.divf %9, %10 : vector<16x64xf32>
    %12 = arith.mulf %6, %11 : vector<16x64xf32>
    %13 = arith.truncf %12 : vector<16x64xf32> to vector<16x64xbf16>
    %c0_6 = arith.constant 0 : index
    %c0_7 = arith.constant 0 : index
    %14 = vector.load %arg4[%c0_6, %c0_7] : memref<64x32xbf16, #tpu.memory_space<vmem>>, vector<64x32xbf16>
    %cst_8 = arith.constant dense<0.000000e+00> : vector<16x32xf32>
    %15 = tpu.matmul %13, %14, %cst_8 {dimension_numbers = #tpu.dot_dimension_numbers<[1], [0], [0], [1], [0, 0, 1, 1], [], []>} : vector<16x64xbf16>, vector<64x32xbf16>, vector<16x32xf32> -> vector<16x32xf32>
    %c0_9 = arith.constant 0 : index
    %c0_10 = arith.constant 0 : index
    %16 = vector.load %arg5[%c0_9, %c0_10] : memref<1x32xf32, #tpu.memory_space<vmem>>, vector<1x32xf32>
    %17 = vector.broadcast %16 : vector<1x32xf32> to vector<16x32xf32>
    %18 = arith.addf %15, %17 : vector<16x32xf32>
    %c0_11 = arith.constant 0 : index
    %c0_12 = arith.constant 0 : index
    %19 = vector.load %arg6[%c0_11, %c0_12] : memref<16x32xf32, #tpu.memory_space<vmem>>, vector<16x32xf32>
    tpu.vector_store %arg6[%c0_11, %c0_12], %18 {strides = array<i32>} : memref<16x32xf32, #tpu.memory_space<vmem>>, vector<16x32xf32>,
    return
  }
  func.func @transform_0(%arg0: i32) -> (i32, i32) {
    %c0_i32 = arith.constant 0 : i32
    %c0_i32_0 = arith.constant 0 : i32
    return %arg0, %c0_i32 : i32, i32
  }
  func.func @transform_1(%arg0: i32) -> (i32, i32) {
    %c0_i32 = arith.constant 0 : i32
    %c0_i32_0 = arith.constant 0 : i32
    %c0_i32_1 = arith.constant 0 : i32
    return %c0_i32, %c0_i32_0 : i32, i32
  }
  func.func @transform_2(%arg0: i32) -> (i32, i32) {
    %c0_i32 = arith.constant 0 : i32
    %c0_i32_0 = arith.constant 0 : i32
    %c0_i32_1 = arith.constant 0 : i32
    return %c0_i32, %c0_i32_0 : i32, i32
  }
  func.func @transform_3(%arg0: i32) -> (i32, i32) {
    %c0_i32 = arith.constant 0 : i32
    %c0_i32_0 = arith.constant 0 : i32
    %c0_i32_1 = arith.constant 0 : i32
    return %c0_i32, %c0_i32_0 : i32, i32
  }
  func.func @transform_4(%arg0: i32) -> (i32, i32) {
    %c0_i32 = arith.constant 0 : i32
    %c0_i32_0 = arith.constant 0 : i32
    %c0_i32_1 = arith.constant 0 : i32
    return %c0_i32, %c0_i32_0 : i32, i32
  }
  func.func @transform_5(%arg0: i32) -> (i32, i32) {
    %c0_i32 = arith.constant 0 : i32
    %c0_i32_0 = arith.constant 0 : i32
    return %arg0, %c0_i32 : i32, i32
  }
}

</mosaic_0001>

<bundles_post_ra>
// kernel: conformer_feed_forward.1
= control target key start
LH: loop header
LB: loop body
LE: loop exit
PB: predicated region body
PF: predicated region fallthrough
CT: control target
= control target key end

     0   :  { %v291_v1 = vmov 0.0   ;;  %vm292_vm0 = vmmov 0   ;;  %s362_s0 = inlined_call_operand.vmem [shape: f32[16,32], index: 0, kind: input, shape index: {}]   ;;  %s363_s1 = inlined_call_operand.vmem [shape: bf16[32,64], index: 1, kind: input, shape index: {}]   ;;  %s364_s2 = inlined_call_operand.vmem [shape: f32[1,64], index: 2, kind: input, shape index: {}]   ;;  %s365_s3 = inlined_call_operand.vmem [shape: bf16[64,32], index: 3, kind: input, shape index: {}]   ;;  %s366_s4 = inlined_call_operand.vmem [shape: f32[1,32], index: 4, kind: input, shape index: {}]   ;;  %s367_s5 = inlined_call_operand.hbm [shape: f32[16,32], index: 5, kind: output, shape index: {}]  }
   0x1   :  { %v255_v0 = vld [vmem:[%s363_s1 + $0x8] sm:$0xff]   ;;  %230 = vmatprep.subr.bf16.mxu0 %v291_v1  ;;  %238 = vmatprep.subr.bf16.mxu1 %v291_v1  ;;  %v256_v2 = vld [vmem:[%s363_s1] sm:$0xff]  }
   0x2   :  { %231 = vmatpush3.bf16.msra.mxu0 %v255_v0  ;;  %234 = vmatprep.mubr.msk.bf16.mxu0 %vm292_vm0, %v291_v1  ;;  %v22_v3 = vld [vmem:[%s362_s0] sm:$0xff]  ;;  %v23_v4 = vld [vmem:[%s362_s0 + $0x8] sm:$0xff] }
   0x3   :  { %232 = vmatprep.subr.bf16.mxu0 %v291_v1  ;;  %246 = vmatprep.mubr.msk.bf16.mxu1 %vm292_vm0, %v291_v1  ;;  %v24_v5 = vpack.c.bf16 %v23_v4, %v22_v3 }
   0x4   :  { %10 = vsyncpa [#allocation3], 0  ;;  %vm48_vm1 = vcmask 261120   ;;  %v257_v6 = vld [vmem:[%s365_s3 + $0x18] sm:$0xff]   ;;  %v258_v7 = vld [vmem:[%s365_s3 + $0x10] sm:$0xff]   ;;  %vm147_vm2 = vcmask 523264  }
   0x5   :  { %239 = vmatpush3.bf16.msra.mxu1 %v257_v6  ;;  %v259_v8 = vld [vmem:[%s365_s3 + $0x8] sm:$0xff]   ;;  %v260_v9 = vld [vmem:[%s365_s3] sm:$0xff]   ;;  %s293_s9 = smov [#allocation2]  }
   0x6   :  { %233 = vmatpush3.bf16.msra.mxu0 %v256_v2  ;;  %240 = vmatprep.subr.bf16.mxu1 %v291_v1  ;;  %v210_v10 = vld [vmem:[%s364_s2] ss:$0 sm:$0xff]  ;;  %s199_s10 = sshll.u32 %s293_s9, 4  ;;  %s200_s10 = int_to_ptr.vmem [resolvable:$true] %s199_s10 }
   0x7   :  { %v216_v28 = vld [vmem:[%s366_s4] ss:$0 sm:$0xff]  ;;  %s269_s11 = scalar_lea.vmem %s200_s10, 256  ;;  %p274_p1 = scmp.lt.s32.totalorder %s200_s10, %s200_s10 }
   0x8   :  { %p270_p0 = scmp.ne.s32.totalorder %s200_s10, %s269_s11  ;;  %p275_p2 = scmp.lt.s32.totalorder %s269_s11, %s269_s11 }
   0x9   :  { %235 = vmatmul.mubr.msk.bf16.vlgmr.msra.gmra.mxu0 %vm48_vm1, %v24_v5  ;;  %241 = vmatpush3.bf16.msra.mxu1 %v258_v7 }
   0xa   :  { %242 = vmatprep.subr.bf16.mxu1 %v291_v1  ;;  %p276_p3 = por %p275_p2, %p274_p1 }
   0xc   :  { %p277_p4 = pnand %p276_p3, %p270_p0 }
   0xd   :  { %243 = vmatpush3.bf16.msra.mxu1 %v259_v8 }
   0xe   :  { %244 = vmatprep.subr.bf16.mxu1 %v291_v1 }
  0x11   :  { %245 = vmatpush3.bf16.msra.mxu1 %v260_v9 }
  0xc9   :  { %v86_v11 = vpop.f32.mrf.mxu0 }
  0xca   :  { %v87_v12 = vadd.f32 %v210_v10, %v86_v11 }
  0xcb   :  { %v236_v13 = vpop.f32.mrf.mxu0 }
  0xcc   :  { %v214_v14 = vmul.f32 -1.442695, %v87_v12 }
  0xcd   :  { %v89_v15 = vpop.f32.mrf.mxu0 }
  0xce   :  { %261 = vpow2.f32 %v214_v14  ;;  %v90_v16 = vadd.f32 %v210_v10, %v89_v15 }
  0xcf   :  { %v237_v17 = vpop.f32.mrf.mxu0 }
  0xd0   :  { %v215_v18 = vmul.f32 -1.442695, %v90_v16 }
  0xd2   :  { %263 = vpow2.f32 %v215_v18 }
  0xdb   :  { %v262_v19 = vpop.eup %261 }
  0xdc   :  { %v99_v20 = vadd.f32 1.0, %v262_v19 }
  0xde   :  { %265 = vrcp.f32 %v99_v20 }
  0xdf   :  { %v264_v21 = vpop.eup %263 }
  0xe0   :  { %v100_v22 = vadd.f32 1.0, %v264_v21 }
  0xe2   :  { %267 = vrcp.f32 %v100_v22 }
  0xeb   :  { %v266_v23 = vpop.eup %265 }
  0xec   :  { %v105_v25 = vmul.f32 %v266_v23, %v87_v12 }
  0xef   :  { %v268_v24 = vpop.eup %267 }
  0xf0   :  { %v106_v26 = vmul.f32 %v268_v24, %v90_v16 }
  0xf2   :  { %v107_v27 = vpack.c.bf16 %v106_v26, %v105_v25 }
  0xf4   :  { %247 = vmatmul.mubr.msk.bf16.vlgmr.msra.gmra.mxu1 %vm147_vm2, %v107_v27 }
 0x1b4   :  { %v185_v29 = vpop.f32.mrf.mxu1 }
 0x1b5   :  { %v186_v30 = vadd.f32 %v216_v28, %v185_v29 }
 0x1b6   :  { %v248_v31 = vpop.f32.mrf.mxu1 }
 0x1b7   :  { %192 = vst.msk [vmem:[#allocation2] sm:$0xff] %vm48_vm1, %v186_v30 }
 0x1b8   :  { %v188_v32 = vpop.f32.mrf.mxu1 }
 0x1b9   :  { %v189_v33 = vadd.f32 %v216_v28, %v188_v32 }
 0x1ba   :  { %v249_v34 = vpop.f32.mrf.mxu1 }
 0x1bb   :  { %193 = vst.msk [vmem:[#allocation2 + $0x8] sm:$0xff] %vm48_vm1, %v189_v33 }
 0x1bc   :  { %280 = shalt.err (!%p277_p4)
}
 0x1bd   :  { %s294_s4 = smov 128   ;;  %s295_s12 = smov 8  }
 0x1be   :  { %205 = dma.vmem_to_hbm [thread:$0]  %s200_s10, 256, %s367_s5, [#allocation3], %s294_s4, %s294_s4, %s295_s12  }
 0x1bf   :  { %289 = dma.done.wait [#allocation3], 256  }
 0x1c0   :  { %290 = vsyncadd [#allocation3], 4294967040 }
 0x1c1   :  { %209 = vsyncpa [#allocation3], 1 }

</bundles_post_ra>
